<compile_context>
chip_gen: v5e
topology: v5e:2x2
jax: 0.10.0
libtpu: 0.0.40
codegen_flags: <defaults>
</compile_context>

<pallas_src>
import functools

import jax
import jax.numpy as jnp
from jax.experimental import pallas as pl
from jax.experimental.pallas import tpu as pltpu


# ----------------------------------------------------------------------------
# Single fused kernel: all stages + KD regressors + ReLU/GAP/FC head.
# One grid step == one batch sample; activations are (C, HW) with HW on lanes.
# ----------------------------------------------------------------------------
def _fused_forward_kernel(*refs, n_stages, ns, emit_kd, emit_teacher, pre_relu):
    it = iter(refs)
    x_ref = next(it)
    w_refs, b_refs = [], []
    for _ in range(n_stages):
        w_refs.append(next(it))
        b_refs.append(next(it))
    wkd_refs, bkd_refs = [], []
    if emit_kd:
        for _ in range(n_stages):
            wkd_refs.append(next(it))
            bkd_refs.append(next(it))
    fcw_ref = next(it)
    fcb_ref = next(it)
    logits_ref = next(it)
    kd_refs = [next(it) for _ in range(n_stages)] if emit_kd else []
    t_refs = [next(it) for _ in range(n_stages)] if emit_teacher else []

    act = x_ref[0]                         # (Cin, HW) bf16, channels on sublanes
    zs = None
    for s in range(n_stages):
        # One MXU dot covers the student conv and (when needed) the teacher
        # conv, via concatenated / block-diagonal weights built in the wrapper.
        z = jnp.dot(w_refs[s][...], act,
                    preferred_element_type=jnp.float32) + b_refs[s][...]
        zs = z[:ns[s], :]                                    # student pre-act
        if emit_kd:
            kd_in = zs if pre_relu else jnp.maximum(zs, 0.0)
            # /100 normalization is already folded into wkd/bkd.
            kd = jnp.dot(wkd_refs[s][...], kd_in.astype(jnp.bfloat16),
                         preferred_element_type=jnp.float32) + bkd_refs[s][...]
            kd_refs[s][0] = kd.astype(kd_refs[s].dtype)      # lane-dense (C, HW)
        if emit_teacher:
            zt = z[ns[s]:, :]
            t_feat = zt if pre_relu else jnp.maximum(zt, 0.0)
            t_refs[s][0] = t_feat.astype(t_refs[s].dtype)
        if s + 1 < n_stages:
            act = jnp.maximum(z, 0.0).astype(jnp.bfloat16)   # next stage input

    # Head: ReLU + GAP + FC fused.  FC before GAP (linear => identical result)
    # keeps the matmul lane-dense; the mean over lanes is a cheap XLU reduce.
    h = jnp.maximum(zs, 0.0)                                  # (C_last, HW) f32
    fc_full = jnp.dot(fcw_ref[...], h, preferred_element_type=jnp.float32)
    logits = jnp.mean(fc_full, axis=1, keepdims=True) + fcb_ref[...]
    logits_ref[0] = logits.astype(logits_ref.dtype)           # (NC, 1)


def _check_vmem_budget(c_in, hw, ns, nt, num_classes, emit_kd, emit_teacher):
    """Rough per-grid-step footprint (lane/sublane padded, x2 double-buffer)."""
    def blk(rows, cols, itemsize):
        return -(-rows // 8) * 8 * -(-cols // 128) * 128 * itemsize

    total = 2 * blk(c_in, hw, 2)                       # bf16 input block
    for i in range(len(ns)):
        rows = ns[i] + (nt[i] if emit_teacher else 0)
        total += blk(rows, hw, 4)                      # resident pre-activation
        if emit_kd:
            total += 2 * blk(ns[i], hw, 4)             # KD output block
        if emit_teacher:
            total += 2 * blk(nt[i], hw, 4)             # teacher output block
    total += 2 * blk(num_classes, 1, 4)
    budget = 24 * 1024 * 1024
    # TODO(synk): if this ever trips (very large H*W or channel counts), add an
    # HW grid axis with a per-sample GAP accumulator instead of whole-sample blocks.
    assert total <= budget, f"fused block footprint {total} B exceeds {budget} B"


# ----------------------------------------------------------------------------
# Wrapper: weight merging / scaling (one-time, tiny) + the single pallas_call.
# ----------------------------------------------------------------------------
def model_builder_forward(params, x, *, normalized, preReLU, training):
    B, c_in, H, W = x.shape
    hw = H * W
    num_classes = params["s"]["fc_w"].shape[0]

    emit_kd = training
    # With normalized=True the reference discards every teacher-derived value
    # (normal_t is never populated, and this synthetic model_kd's ret_s depends
    # only on the student), so the teacher branch is dead work and skipped.
    emit_teacher = training and (not normalized)

    stages_s = params["s"]["stages"]           # [(w (Cout,Cin), b (Cout,)), ...]
    stages_t = params["t"]["stages"]
    n_stages = len(stages_s)
    ns = tuple(w.shape[0] for w, _ in stages_s)
    nt = tuple(w.shape[0] for w, _ in stages_t)

    mxu_dtype = jnp.bfloat16

    # Merge student/teacher convs: stage 0 shares the input (concat outputs),
    # later stages use a block-diagonal weight -> ONE MXU dot per stage.
    stage_ws, stage_bs = [], []
    for s in range(n_stages):
        w_s, b_s = stages_s[s]
        if emit_teacher:
            w_t, b_t = stages_t[s]
            if s == 0:
                w = jnp.concatenate([w_s, w_t], axis=0)
            else:
                top = jnp.concatenate(
                    [w_s, jnp.zeros((ns[s], nt[s - 1]), w_s.dtype)], axis=1)
                bot = jnp.concatenate(
                    [jnp.zeros((nt[s], ns[s - 1]), w_t.dtype), w_t], axis=1)
                w = jnp.concatenate([top, bot], axis=0)
            b = jnp.concatenate([b_s, b_t], axis=0)
        else:
            w, b = w_s, b_s
        stage_ws.append(w.astype(mxu_dtype))
        stage_bs.append(b.astype(jnp.float32).reshape(-1, 1))

    kd_ws, kd_bs = [], []
    if emit_kd:
        kd_scale = 0.01 if normalized else 1.0     # /100 folded into the weights
        for w_k, b_k in params["kd"]:
            kd_ws.append((w_k * kd_scale).astype(mxu_dtype))
            kd_bs.append((b_k * kd_scale).astype(jnp.float32).reshape(-1, 1))

    fc_w = params["s"]["fc_w"].astype(jnp.float32)
    fc_b = params["s"]["fc_b"].astype(jnp.float32).reshape(-1, 1)

    # NCHW is already (B, C, HW) channels-as-sublanes: pure reshape, no transpose.
    x_chw = x.reshape(B, c_in, hw).astype(mxu_dtype)

    def rep(shape):        # weight blocks: same block every step -> stay resident
        return pl.BlockSpec(shape, lambda b: (0,) * len(shape))

    inputs = [x_chw]
    in_specs = [pl.BlockSpec((1, c_in, hw), lambda b: (b, 0, 0))]
    for w, bias in zip(stage_ws, stage_bs):
        inputs += [w, bias]
        in_specs += [rep(w.shape), rep(bias.shape)]
    for w, bias in zip(kd_ws, kd_bs):
        inputs += [w, bias]
        in_specs += [rep(w.shape), rep(bias.shape)]
    inputs += [fc_w, fc_b]
    in_specs += [rep(fc_w.shape), rep(fc_b.shape)]

    out_shapes = [jax.ShapeDtypeStruct((B, num_classes, 1), jnp.float32)]
    out_specs = [pl.BlockSpec((1, num_classes, 1), lambda b: (b, 0, 0))]
    if emit_kd:
        for c in ns:
            out_shapes.append(jax.ShapeDtypeStruct((B, c, hw), jnp.float32))
            out_specs.append(pl.BlockSpec((1, c, hw), lambda b: (b, 0, 0)))
    if emit_teacher:
        for c in nt:
            out_shapes.append(jax.ShapeDtypeStruct((B, c, hw), jnp.float32))
            out_specs.append(pl.BlockSpec((1, c, hw), lambda b: (b, 0, 0)))

    _check_vmem_budget(c_in, hw, ns, nt, num_classes, emit_kd, emit_teacher)

    kernel = functools.partial(
        _fused_forward_kernel, n_stages=n_stages, ns=ns,
        emit_kd=emit_kd, emit_teacher=emit_teacher, pre_relu=preReLU)

    outs = pl.pallas_call(
        kernel,
        out_shape=tuple(out_shapes),
        grid=(B,),
        in_specs=in_specs,
        out_specs=tuple(out_specs),
        compiler_params=pltpu.CompilerParams(
            dimension_semantics=("parallel",),    # batch split across TCs on v7x
            vmem_limit_bytes=32 * 1024 * 1024),
    )(*inputs)

    logits = outs[0].reshape(B, num_classes)
    if not training:
        return logits

    k = 1
    # Kernel outputs are already (B, C, HW): a free reshape gives NCHW.
    ret_s = [outs[k + i].reshape(B, ns[i], H, W) for i in range(n_stages)]
    k += n_stages
    if emit_teacher:
        ret_t = [jax.lax.stop_gradient(outs[k + i]).reshape(B, nt[i], H, W)
                 for i in range(n_stages)]
    else:
        ret_t = []      # faithful: normalized=True never populates normal_t
    # NOTE: the reference computes per-sample L2 norms here and discards them;
    # they affect no returned value and are not materialized.
    return logits, ret_s, ret_t


# ----------------------------------------------------------------------------
# Pure-JAX f32 reference of the same synthetic model (for correctness checks).
# ----------------------------------------------------------------------------
def _reference_forward(params, x, *, normalized, preReLU, training):
    B, c_in, H, W = x.shape
    hw = H * W

    def conv1x1(a, w, b):               # a: (B, Cin, HW), w: (Cout, Cin)
        return jnp.einsum("oi,bim->bom", w, a) + b[None, :, None]

    a_s = x.reshape(B, c_in, hw)
    a_t = a_s
    feats_s, feats_t = [], []
    for (ws, bs), (wt, bt) in zip(params["s"]["stages"], params["t"]["stages"]):
        zs = conv1x1(a_s, ws, bs)
        zt = conv1x1(a_t, wt, bt)
        feats_s.append(zs if preReLU else jnp.maximum(zs, 0.0))
        feats_t.append(zt if preReLU else jnp.maximum(zt, 0.0))
        a_s = jnp.maximum(zs, 0.0)
        a_t = jnp.maximum(zt, 0.0)
    pooled = jnp.mean(a_s, axis=2)                               # (B, C_last)
    logits = pooled @ params["s"]["fc_w"].T + params["s"]["fc_b"]
    if not training:
        return logits
    ret_s = [conv1x1(f, wk, bk) for f, (wk, bk) in zip(feats_s, params["kd"])]
    ret_t = list(feats_t)
    if normalized:
        ret_s = [r / 100.0 for r in ret_s]
        ret_t = []
    ret_s = [r.reshape(B, -1, H, W) for r in ret_s]
    ret_t = [r.reshape(B, -1, H, W) for r in ret_t]
    return logits, ret_s, ret_t


# ----------------------------------------------------------------------------
# Deterministic parameter construction.  Weights use PyTorch's native layouts:
# conv1x1 (Cout, Cin) and nn.Linear (out, in) — no transpose needed to load a
# real checkpoint.
# ----------------------------------------------------------------------------
def make_backbone_params(key, c_in, channels, num_classes):
    keys = jax.random.split(key, 2 * len(channels) + 2)
    stages = []
    prev = c_in
    for i, c in enumerate(channels):
        w = 0.1 * jax.random.normal(keys[2 * i], (c, prev), jnp.float32)
        b = 0.05 * jax.random.normal(keys[2 * i + 1], (c,), jnp.float32)
        stages.append((w, b))
        prev = c
    fc_w = 0.1 * jax.random.normal(keys[-2], (num_classes, prev), jnp.float32)
    fc_b = 0.05 * jax.random.normal(keys[-1], (num_classes,), jnp.float32)
    return {"stages": stages, "fc_w": fc_w, "fc_b": fc_b}


def make_kd_params(key, channels):
    keys = jax.random.split(key, 2 * len(channels))
    kd = []
    for i, c in enumerate(channels):
        w = 0.1 * jax.random.normal(keys[2 * i], (c, c), jnp.float32)
        b = jnp.zeros((c,), jnp.float32)
        kd.append((w, b))
    return kd


# ----------------------------------------------------------------------------
if __name__ == "__main__":
    B, C_IN, H, W = 2, 4, 16, 16
    CHANNELS = (8, 16)
    NUM_CLASSES = 10

    root = jax.random.PRNGKey(0)
    k_x, k_s, k_t, k_kd = jax.random.split(root, 4)

    x = jax.random.normal(k_x, (B, C_IN, H, W), jnp.float32)   # NCHW input
    params = {
        "s": make_backbone_params(k_s, C_IN, CHANNELS, NUM_CLASSES),
        "t": make_backbone_params(k_t, C_IN, CHANNELS, NUM_CLASSES),
        "kd": make_kd_params(k_kd, CHANNELS),
    }
    # TODO(synk): `requires_grad=False` freezing of model_t has no forward-pass
    # equivalent; stop_gradient on returned teacher features stands in for it.

    # --- training, normalized=True (the configuration under test) ----------
    logits, ret_s, ret_t = model_builder_forward(
        params, x, normalized=True, preReLU=True, training=True)
    jax.block_until_ready(logits)
    for r in ret_s:
        jax.block_until_ready(r)

    assert logits.shape == (B, NUM_CLASSES)
    assert [r.shape for r in ret_s] == [(B, CHANNELS[0], H, W),
                                        (B, CHANNELS[1], H, W)]
    assert ret_t == []            # faithful: the reference never fills normal_t

    ref_logits, ref_s, _ = _reference_forward(
        params, x, normalized=True, preReLU=True, training=True)
    assert bool(jnp.allclose(logits, ref_logits, rtol=5e-2, atol=5e-3))
    for got, want in zip(ret_s, ref_s):
        assert bool(jnp.allclose(got, want, rtol=5e-2, atol=5e-3))

    # --- training, normalized=False (exercises the fused teacher branch) ---
    logits2, ret_s2, ret_t2 = model_builder_forward(
        params, x, normalized=False, preReLU=True, training=True)
    jax.block_until_ready(logits2)
    assert [r.shape for r in ret_t2] == [(B, CHANNELS[0], H, W),
                                         (B, CHANNELS[1], H, W)]
    ref_logits2, ref_s2, ref_t2 = _reference_forward(
        params, x, normalized=False, preReLU=True, training=True)
    assert bool(jnp.allclose(logits2, ref_logits2, rtol=5e-2, atol=5e-3))
    for got, want in zip(ret_s2 + ret_t2, ref_s2 + ref_t2):
        assert bool(jnp.allclose(got, want, rtol=5e-2, atol=5e-3))

    # --- eval: logits only (KD / teacher compute compiled out) -------------
    logits_eval = model_builder_forward(
        params, x, normalized=True, preReLU=True, training=False)
    jax.block_until_ready(logits_eval)
    assert logits_eval.shape == (B, NUM_CLASSES)

    print("KERNEL_OK")
</pallas_src>

<mosaic_0001>
module attributes {stable_mosaic.version = 11 : i64} {
  func.func @_fused_forward_kernel(%arg0: i32, %arg1: memref<1x4x256xbf16, #tpu.memory_space<vmem>>, %arg2: memref<8x4xbf16, #tpu.memory_space<vmem>>, %arg3: memref<8x1xf32, #tpu.memory_space<vmem>>, %arg4: memref<16x8xbf16, #tpu.memory_space<vmem>>, %arg5: memref<16x1xf32, #tpu.memory_space<vmem>>, %arg6: memref<8x8xbf16, #tpu.memory_space<vmem>>, %arg7: memref<8x1xf32, #tpu.memory_space<vmem>>, %arg8: memref<16x16xbf16, #tpu.memory_space<vmem>>, %arg9: memref<16x1xf32, #tpu.memory_space<vmem>>, %arg10: memref<10x16xf32, #tpu.memory_space<vmem>>, %arg11: memref<10x1xf32, #tpu.memory_space<vmem>>, %arg12: memref<1x10x1xf32, #tpu.memory_space<vmem>>, %arg13: memref<1x8x256xf32, #tpu.memory_space<vmem>>, %arg14: memref<1x16x256xf32, #tpu.memory_space<vmem>>) attributes {dimension_semantics = [#tpu.dimension_semantics<parallel>], iteration_bounds = array<i64: 2>, scalar_prefetch = 0 : i64, scratch_operands = 0 : i64, tpu.core_type = #tpu.core_type<tc>, window_params = [{transform_indices = @transform_0, window_bounds = array<i64: 1, 4, 256>}, {pipeline_mode = #tpu.pipeline_mode<synchronous>, transform_indices = @transform_1, window_bounds = array<i64: 8, 4>}, {pipeline_mode = #tpu.pipeline_mode<synchronous>, transform_indices = @transform_2, window_bounds = array<i64: 8, 1>}, {pipeline_mode = #tpu.pipeline_mode<synchronous>, transform_indices = @transform_3, window_bounds = array<i64: 16, 8>}, {pipeline_mode = #tpu.pipeline_mode<synchronous>, transform_indices = @transform_4, window_bounds = array<i64: 16, 1>}, {pipeline_mode = #tpu.pipeline_mode<synchronous>, transform_indices = @transform_5, window_bounds = array<i64: 8, 8>}, {pipeline_mode = #tpu.pipeline_mode<synchronous>, transform_indices = @transform_6, window_bounds = array<i64: 8, 1>}, {pipeline_mode = #tpu.pipeline_mode<synchronous>, transform_indices = @transform_7, window_bounds = array<i64: 16, 16>}, {pipeline_mode = #tpu.pipeline_mode<synchronous>, transform_indices = @transform_8, window_bounds = array<i64: 16, 1>}, {pipeline_mode = #tpu.pipeline_mode<synchronous>, transform_indices = @transform_9, window_bounds = array<i64: 10, 16>}, {pipeline_mode = #tpu.pipeline_mode<synchronous>, transform_indices = @transform_10, window_bounds = array<i64: 10, 1>}, {transform_indices = @transform_11, window_bounds = array<i64: 1, 10, 1>}, {transform_indices = @transform_12, window_bounds = array<i64: 1, 8, 256>}, {transform_indices = @transform_13, window_bounds = array<i64: 1, 16, 256>}]} {
    %c0 = arith.constant 0 : index
    %c0_0 = arith.constant 0 : index
    %c0_1 = arith.constant 0 : index
    %0 = vector.load %arg1[%c0, %c0_0, %c0_1] : memref<1x4x256xbf16, #tpu.memory_space<vmem>>, vector<1x4x256xbf16>
    %1 = vector.shape_cast %0 : vector<1x4x256xbf16> to vector<4x256xbf16>
    %c0_2 = arith.constant 0 : index
    %c0_3 = arith.constant 0 : index
    %2 = vector.load %arg2[%c0_2, %c0_3] : memref<8x4xbf16, #tpu.memory_space<vmem>>, vector<8x4xbf16>
    %cst = arith.constant dense<0.000000e+00> : vector<8x256xf32>
    %3 = tpu.matmul %2, %1, %cst {dimension_numbers = #tpu.dot_dimension_numbers<[1], [0], [0], [1], [0, 0, 1, 1], [], []>} : vector<8x4xbf16>, vector<4x256xbf16>, vector<8x256xf32> -> vector<8x256xf32>
    %c0_4 = arith.constant 0 : index
    %c0_5 = arith.constant 0 : index
    %4 = vector.load %arg3[%c0_4, %c0_5] : memref<8x1xf32, #tpu.memory_space<vmem>>, vector<8x1xf32>
    %5 = vector.broadcast %4 : vector<8x1xf32> to vector<8x256xf32>
    %6 = arith.addf %3, %5 : vector<8x256xf32>
    %c0_6 = arith.constant 0 : index
    %c0_7 = arith.constant 0 : index
    %7 = vector.load %arg6[%c0_6, %c0_7] : memref<8x8xbf16, #tpu.memory_space<vmem>>, vector<8x8xbf16>
    %8 = arith.truncf %6 : vector<8x256xf32> to vector<8x256xbf16>
    %cst_8 = arith.constant dense<0.000000e+00> : vector<8x256xf32>
    %9 = tpu.matmul %7, %8, %cst_8 {dimension_numbers = #tpu.dot_dimension_numbers<[1], [0], [0], [1], [0, 0, 1, 1], [], []>} : vector<8x8xbf16>, vector<8x256xbf16>, vector<8x256xf32> -> vector<8x256xf32>
    %c0_9 = arith.constant 0 : index
    %c0_10 = arith.constant 0 : index
    %10 = vector.load %arg7[%c0_9, %c0_10] : memref<8x1xf32, #tpu.memory_space<vmem>>, vector<8x1xf32>
    %11 = vector.broadcast %10 : vector<8x1xf32> to vector<8x256xf32>
    %12 = arith.addf %9, %11 : vector<8x256xf32>
    %c0_11 = arith.constant 0 : index
    %c0_12 = arith.constant 0 : index
    %c0_13 = arith.constant 0 : index
    %13 = vector.load %arg13[%c0_11, %c0_12, %c0_13] : memref<1x8x256xf32, #tpu.memory_space<vmem>>, vector<1x8x256xf32>
    %14 = vector.shape_cast %13 : vector<1x8x256xf32> to vector<8x256xf32>
    %15 = vector.shape_cast %12 : vector<8x256xf32> to vector<1x8x256xf32>
    tpu.vector_store %arg13[%c0_11, %c0_12, %c0_13], %15 {strides = array<i32>} : memref<1x8x256xf32, #tpu.memory_space<vmem>>, vector<1x8x256xf32>,
    %cst_14 = arith.constant 0.000000e+00 : f32
    %16 = vector.broadcast %cst_14 : f32 to vector<8x256xf32>
    %17 = arith.maximumf %6, %16 : vector<8x256xf32>
    %18 = arith.truncf %17 : vector<8x256xf32> to vector<8x256xbf16>
    %c0_15 = arith.constant 0 : index
    %c0_16 = arith.constant 0 : index
    %19 = vector.load %arg4[%c0_15, %c0_16] : memref<16x8xbf16, #tpu.memory_space<vmem>>, vector<16x8xbf16>
    %cst_17 = arith.constant dense<0.000000e+00> : vector<16x256xf32>
    %20 = tpu.matmul %19, %18, %cst_17 {dimension_numbers = #tpu.dot_dimension_numbers<[1], [0], [0], [1], [0, 0, 1, 1], [], []>} : vector<16x8xbf16>, vector<8x256xbf16>, vector<16x256xf32> -> vector<16x256xf32>
    %c0_18 = arith.constant 0 : index
    %c0_19 = arith.constant 0 : index
    %21 = vector.load %arg5[%c0_18, %c0_19] : memref<16x1xf32, #tpu.memory_space<vmem>>, vector<16x1xf32>
    %22 = vector.broadcast %21 : vector<16x1xf32> to vector<16x256xf32>
    %23 = arith.addf %20, %22 : vector<16x256xf32>
    %c0_20 = arith.constant 0 : index
    %c0_21 = arith.constant 0 : index
    %24 = vector.load %arg8[%c0_20, %c0_21] : memref<16x16xbf16, #tpu.memory_space<vmem>>, vector<16x16xbf16>
    %25 = arith.truncf %23 : vector<16x256xf32> to vector<16x256xbf16>
    %cst_22 = arith.constant dense<0.000000e+00> : vector<16x256xf32>
    %26 = tpu.matmul %24, %25, %cst_22 {dimension_numbers = #tpu.dot_dimension_numbers<[1], [0], [0], [1], [0, 0, 1, 1], [], []>} : vector<16x16xbf16>, vector<16x256xbf16>, vector<16x256xf32> -> vector<16x256xf32>
    %c0_23 = arith.constant 0 : index
    %c0_24 = arith.constant 0 : index
    %27 = vector.load %arg9[%c0_23, %c0_24] : memref<16x1xf32, #tpu.memory_space<vmem>>, vector<16x1xf32>
    %28 = vector.broadcast %27 : vector<16x1xf32> to vector<16x256xf32>
    %29 = arith.addf %26, %28 : vector<16x256xf32>
    %c0_25 = arith.constant 0 : index
    %c0_26 = arith.constant 0 : index
    %c0_27 = arith.constant 0 : index
    %30 = vector.load %arg14[%c0_25, %c0_26, %c0_27] : memref<1x16x256xf32, #tpu.memory_space<vmem>>, vector<1x16x256xf32>
    %31 = vector.shape_cast %30 : vector<1x16x256xf32> to vector<16x256xf32>
    %32 = vector.shape_cast %29 : vector<16x256xf32> to vector<1x16x256xf32>
    tpu.vector_store %arg14[%c0_25, %c0_26, %c0_27], %32 {strides = array<i32>} : memref<1x16x256xf32, #tpu.memory_space<vmem>>, vector<1x16x256xf32>,
    %cst_28 = arith.constant 0.000000e+00 : f32
    %33 = vector.broadcast %cst_28 : f32 to vector<16x256xf32>
    %34 = arith.maximumf %23, %33 : vector<16x256xf32>
    %c0_29 = arith.constant 0 : index
    %c0_30 = arith.constant 0 : index
    %35 = vector.load %arg10[%c0_29, %c0_30] : memref<10x16xf32, #tpu.memory_space<vmem>>, vector<10x16xf32>
    %cst_31 = arith.constant dense<0.000000e+00> : vector<10x256xf32>
    %36 = tpu.matmul %35, %34, %cst_31 {dimension_numbers = #tpu.dot_dimension_numbers<[1], [0], [0], [1], [0, 0, 1, 1], [], []>} : vector<10x16xf32>, vector<16x256xf32>, vector<10x256xf32> -> vector<10x256xf32>
    %cst_32 = arith.constant dense<0.000000e+00> : vector<10xf32>
    %37 = vector.multi_reduction <add>, %36, %cst_32 [1] : vector<10x256xf32> to vector<10xf32>
    %38 = vector.shape_cast %37 : vector<10xf32> to vector<10x1xf32>
    %cst_33 = arith.constant 2.560000e+02 : f32
    %39 = vector.broadcast %cst_33 : f32 to vector<10x1xf32>
    %40 = arith.divf %38, %39 : vector<10x1xf32>
    %c0_34 = arith.constant 0 : index
    %c0_35 = arith.constant 0 : index
    %41 = vector.load %arg11[%c0_34, %c0_35] : memref<10x1xf32, #tpu.memory_space<vmem>>, vector<10x1xf32>
    %42 = arith.addf %40, %41 : vector<10x1xf32>
    %c0_36 = arith.constant 0 : index
    %c0_37 = arith.constant 0 : index
    %c0_38 = arith.constant 0 : index
    %43 = vector.load %arg12[%c0_36, %c0_37, %c0_38] : memref<1x10x1xf32, #tpu.memory_space<vmem>>, vector<1x10x1xf32>
    %44 = vector.shape_cast %43 : vector<1x10x1xf32> to vector<10x1xf32>
    %45 = vector.shape_cast %42 : vector<10x1xf32> to vector<1x10x1xf32>
    tpu.vector_store %arg12[%c0_36, %c0_37, %c0_38], %45 {strides = array<i32>} : memref<1x10x1xf32, #tpu.memory_space<vmem>>, vector<1x10x1xf32>,
    return
  }
  func.func @transform_0(%arg0: i32) -> (i32, i32, i32) {
    %c0_i32 = arith.constant 0 : i32
    %c0_i32_0 = arith.constant 0 : i32
    %c0_i32_1 = arith.constant 0 : i32
    return %arg0, %c0_i32, %c0_i32_0 : i32, i32, i32
  }
  func.func @transform_1(%arg0: i32) -> (i32, i32) {
    %c0_i32 = arith.constant 0 : i32
    %c0_i32_0 = arith.constant 0 : i32
    %c0_i32_1 = arith.constant 0 : i32
    return %c0_i32, %c0_i32_0 : i32, i32
  }
  func.func @transform_2(%arg0: i32) -> (i32, i32) {
    %c0_i32 = arith.constant 0 : i32
    %c0_i32_0 = arith.constant 0 : i32
    %c0_i32_1 = arith.constant 0 : i32
    return %c0_i32, %c0_i32_0 : i32, i32
  }
  func.func @transform_3(%arg0: i32) -> (i32, i32) {
    %c0_i32 = arith.constant 0 : i32
    %c0_i32_0 = arith.constant 0 : i32
    %c0_i32_1 = arith.constant 0 : i32
    return %c0_i32, %c0_i32_0 : i32, i32
  }
  func.func @transform_4(%arg0: i32) -> (i32, i32) {
    %c0_i32 = arith.constant 0 : i32
    %c0_i32_0 = arith.constant 0 : i32
    %c0_i32_1 = arith.constant 0 : i32
    return %c0_i32, %c0_i32_0 : i32, i32
  }
  func.func @transform_5(%arg0: i32) -> (i32, i32) {
    %c0_i32 = arith.constant 0 : i32
    %c0_i32_0 = arith.constant 0 : i32
    %c0_i32_1 = arith.constant 0 : i32
    return %c0_i32, %c0_i32_0 : i32, i32
  }
  func.func @transform_6(%arg0: i32) -> (i32, i32) {
    %c0_i32 = arith.constant 0 : i32
    %c0_i32_0 = arith.constant 0 : i32
    %c0_i32_1 = arith.constant 0 : i32
    return %c0_i32, %c0_i32_0 : i32, i32
  }
  func.func @transform_7(%arg0: i32) -> (i32, i32) {
    %c0_i32 = arith.constant 0 : i32
    %c0_i32_0 = arith.constant 0 : i32
    %c0_i32_1 = arith.constant 0 : i32
    return %c0_i32, %c0_i32_0 : i32, i32
  }
  func.func @transform_8(%arg0: i32) -> (i32, i32) {
    %c0_i32 = arith.constant 0 : i32
    %c0_i32_0 = arith.constant 0 : i32
    %c0_i32_1 = arith.constant 0 : i32
    return %c0_i32, %c0_i32_0 : i32, i32
  }
  func.func @transform_9(%arg0: i32) -> (i32, i32) {
    %c0_i32 = arith.constant 0 : i32
    %c0_i32_0 = arith.constant 0 : i32
    %c0_i32_1 = arith.constant 0 : i32
    return %c0_i32, %c0_i32_0 : i32, i32
  }
  func.func @transform_10(%arg0: i32) -> (i32, i32) {
    %c0_i32 = arith.constant 0 : i32
    %c0_i32_0 = arith.constant 0 : i32
    %c0_i32_1 = arith.constant 0 : i32
    return %c0_i32, %c0_i32_0 : i32, i32
  }
  func.func @transform_11(%arg0: i32) -> (i32, i32, i32) {
    %c0_i32 = arith.constant 0 : i32
    %c0_i32_0 = arith.constant 0 : i32
    %c0_i32_1 = arith.constant 0 : i32
    return %arg0, %c0_i32, %c0_i32_0 : i32, i32, i32
  }
  func.func @transform_12(%arg0: i32) -> (i32, i32, i32) {
    %c0_i32 = arith.constant 0 : i32
    %c0_i32_0 = arith.constant 0 : i32
    %c0_i32_1 = arith.constant 0 : i32
    return %arg0, %c0_i32, %c0_i32_0 : i32, i32, i32
  }
  func.func @transform_13(%arg0: i32) -> (i32, i32, i32) {
    %c0_i32 = arith.constant 0 : i32
    %c0_i32_0 = arith.constant 0 : i32
    %c0_i32_1 = arith.constant 0 : i32
    return %arg0, %c0_i32, %c0_i32_0 : i32, i32, i32
  }
}

</mosaic_0001>

<bundles_post_ra>
// kernel: tpu_custom_call.1
= control target key start
LH: loop header
LB: loop body
LE: loop exit
PB: predicated region body
PF: predicated region fallthrough
CT: control target
= control target key end

     0   :  { %s1357_s0 = inlined_call_operand.vmem [shape: bf16[2,4,256], index: 0, kind: input, shape index: {}]   ;;  %s1358_s1 = inlined_call_operand.vmem [shape: bf16[8,4], index: 1, kind: input, shape index: {}]   ;;  %s1359_s2 = inlined_call_operand.vmem [shape: f32[8,1], index: 2, kind: input, shape index: {}]   ;;  %s1360_s3 = inlined_call_operand.vmem [shape: bf16[16,8], index: 3, kind: input, shape index: {}]   ;;  %s1361_s4 = inlined_call_operand.vmem [shape: f32[16,1], index: 4, kind: input, shape index: {}]   ;;  %s1362_s5 = inlined_call_operand.vmem [shape: bf16[8,8], index: 5, kind: input, shape index: {}]   ;;  %s1363_s6 = inlined_call_operand.vmem [shape: f32[8,1], index: 6, kind: input, shape index: {}]   ;;  %s1364_s7 = inlined_call_operand.vmem [shape: bf16[16,16], index: 7, kind: input, shape index: {}]   ;;  %s1365_s8 = inlined_call_operand.vmem [shape: f32[16,1], index: 8, kind: input, shape index: {}]   ;;  %s1366_s9 = inlined_call_operand.vmem [shape: f32[10,16], index: 9, kind: input, shape index: {}]   ;;  %s1367_s10 = inlined_call_operand.vmem [shape: f32[10,1], index: 10, kind: input, shape index: {}]   ;;  %s1368_s11 = inlined_call_operand.vmem [shape: f32[2,10,1], index: 11, kind: output, shape index: {0}]   ;;  %s1369_s12 = inlined_call_operand.hbm [shape: f32[2,8,256], index: 12, kind: output, shape index: {1}]   ;;  %s1370_s13 = inlined_call_operand.hbm [shape: f32[2,16,256], index: 13, kind: output, shape index: {2}]  }
   0x1   :  { %1371 = sst [smem:[#allocation8_spill]] %s1357_s0 }
   0x2   :  { %1372 = sst [smem:[#allocation9_spill]] %s1358_s1 }
   0x3   :  { %1373 = sst [smem:[#allocation10_spill]] %s1359_s2 }
   0x4   :  { %1374 = sst [smem:[#allocation11_spill]] %s1360_s3 }
   0x5   :  { %1375 = sst [smem:[#allocation12_spill]] %s1361_s4 }
   0x6   :  { %1376 = sst [smem:[#allocation13_spill]] %s1362_s5 }
   0x7   :  { %1377 = sst [smem:[#allocation14_spill]] %s1364_s7 }
   0x8   :  { %1378 = sst [smem:[#allocation15_spill]] %s1365_s8 }
   0x9   :  { %19 = vsyncpa [#allocation3], 0 }
   0xa   :  { %21 = vsyncpa [#allocation3 + $0x1], 0 }
   0xb   :  { %22 = vsyncpa [#allocation5], 0 }
   0xc   :  { %24 = vsyncpa [#allocation5 + $0x1], 0  ;;  %s1193_s25 = smov 0   ;;  %s1195_s26 = smov 0  }
   0xd   :  { %s1197_s27 = smov 0   ;;  %s1199_s28 = smov 0  }
   0xe LB: > { %s1214_s29 = sadd.s32 4294967295, %s1117_s28   ;;  %s922_s30 = sadd.s32 4294967294, %s1117_s28   ;;  %s1117_s28 = sphi %s1199_s28, %s1392_s28   ;;  %s1113_s27 = sphi %s1197_s27, %s1391_s27   ;;  %s1109_s26 = sphi %s1195_s26, %s1390_s26   ;;  %s1105_s25 = sphi %s1193_s25, %s1389_s25  }
   0xf   : > { %s1218_s14 = sadd.s32 1, %s1117_s28   ;;  %s299_s15 = sadd.s32 1, %s1113_s27 }
  0x10   : > { %s296_s16 = ssub.s32 %s1117_s28, %s1218_s14  ;;  %p309_p0 = scmp.ne.s32.totalorder %s1113_s27, %s1109_s26 }
  0x11   : > { %p297_p1 = scmp.eq.s32.totalorder %s296_s16, 0  ;;  %p310_p2 = scmp.eq.s32.totalorder %s1214_s29, 1 }
  0x12   : > { %p315_p3 = scmp.ne.s32.totalorder %s1109_s26, %s1105_s25  ;;  %p316_p4 = scmp.eq.s32.totalorder %s922_s30, 1 }
  0x13   : > { %s1229_s17 = scalar_select %p297_p1, %s1113_s27, %s299_s15  }
  0x14   : > { %p1231_p5 = por %p310_p2, %p309_p0  ;;  %p1235_p6 = por %p316_p4, %p315_p3 }
  0x15   : > { %p925_p7 = scmp.ge.s32.totalorder %s1117_s28, 1  ;;  %p398_p8 = scmp.lt.s32.totalorder %s1117_s28, 3 }
  0x17   : > { %p399_p9 = pnand %p925_p7, %p398_p8 }
  0x18   : > { %s1381_s2 = sld [smem:[#allocation10_spill]] (!%p399_p9)  ;;  %p452_p10 = scmp.lt.s32.totalorder (!%p399_p9), %s1214_s29, 1 }
  0x19   : > { %402 = sbr.rel (%p399_p9) target bundleno = 607 (0x25f), region = 64  ;;  %s1382_s0 = sld [smem:[#allocation8_spill]] (!%p399_p9) }
  0x1a   : > { %s1383_s4 = sld [smem:[#allocation12_spill]] (!%p399_p9)  ;;  %s965_s16 = sshll.u32 (!%p399_p9), %s1214_s29, 5 }
  0x1b   : > { %s1384_s8 = sld [smem:[#allocation15_spill]] (!%p399_p9)  ;;  %s798_s21 = scalar_lea.hbm (!%p399_p9), %s1370_s13, %s965_s16 }
  0x1c   : > { %s1385_s1 = sld [smem:[#allocation9_spill]] (!%p399_p9) }
  0x1d   : > { %s1386_s5 = sld [smem:[#allocation13_spill]] (!%p399_p9) }
  0x1e   : > { %v465_v0 = vld [vmem:[%s1381_s2] sm:$0xff]  ;;  %v1119_v1 = vmov 0   ;;  %s1246_s22 = scalar_select %p452_p10, %s1214_s29, 1  ;;  %vm479_vm0 = vcmask 1041408   ;;  %vm475_vm1 = vcmask 31744   ;;  %vm523_vm2 = vcmask 1043456  }
  0x1f   : > { %1018 = vset.pattern.permute.xlu0 %v1119_v1  ;;  %1019 = vset.pattern.permute.xlu1 %v1119_v1  ;;  %s1387_s3 = sld [smem:[#allocation11_spill]]  ;;  %vm519_vm3 = vcmask 64512   ;;  %vm639_vm4 = vcmask 130048   ;;  %v679_v52 = vld [vmem:[%s1366_s9] sm:$0xff]  ;;  %v680_v53 = vld [vmem:[%s1366_s9 + $0x8] sm:$0x3] }
  0x20   : > { %468 = vperm.xlu0 %1018, %v465_v0   ;;  %1020 = vset.pattern.permute.xlu2 %v1119_v1  ;;  %s960_s23 = sshll.u32 %s1246_s22, 2  ;;  %v564_v3 = vld [vmem:[%s1383_s4] sm:$0xff]  ;;  %v565_v11 = vld [vmem:[%s1383_s4 + $0x8] sm:$0xff]  ;;  %s1388_s7 = sld [smem:[#allocation14_spill]] }
  0x21   : > { %s456_s15 = scalar_lea.vmem %s1382_s0, %s960_s23  ;;  %v622_v8 = vld [vmem:[%s1384_s8] sm:$0xff]  ;;  %v623_v10 = vld [vmem:[%s1384_s8 + $0x8] sm:$0xff]  ;;  %573 = vperm.xlu1 %1019, %v565_v11   ;;  %s1289_s23 = sand.u32 1, %s1109_s26  }
  0x22   : > { %v463_v2 = vld [vmem:[%s456_s15] sm:$0xf]  ;;  %s927_s24 = sshll.u32 %s1289_s23, 5  ;;  %s769_s0 = scalar_lea.sflag [#allocation5], %s1289_s23 }
  0x23   : > { %472 = vst [vmem:[#allocation1] ss:$4 sm:$0xff] %v463_v2  ;;  %v464_v9 = vld [vmem:[%s1385_s1] sm:$0xf]  ;;  %s451_s30 = scalar_lea.vmem [#allocation4], %s927_s24  ;;  %s801_s24 = sshll.u32 %s798_s21, 4  ;;  %s802_s24 = int_to_ptr.hbm [resolvable:$true] %s801_s24 }
  0x24   : > { %v510_v25 = vld [vmem:[%s1386_s5] sm:$0xf]  ;;  %s799_s15 = sshll.u32 %s451_s30, 4  ;;  %s1037_s1 = sshra.s32 %s802_s24, 4  ;;  %s800_s15 = int_to_ptr.vmem [resolvable:$true] %s799_s15  ;;  %s1038_s1 = int_to_ptr.hbm [resolvable:$true] %s1037_s1 }
  0x25   : > { %v962_v28 = vld [vmem:[%s1387_s3] sm:$0xff]  ;;  %s1039_s3 = scalar_lea.hbm %s1038_s1, 32  ;;  %s1043_s5 = scalar_lea.hbm %s1370_s13, 64 }
  0x26   : > { %v963_v49 = vld [vmem:[%s1388_s7] sm:$0xff]  ;;  %p1040_p11 = scmp.ne.s32.totalorder %s1038_s1, %s1039_s3  ;;  %p1044_p0 = scmp.lt.s32.totalorder %s1038_s1, %s1370_s13 }
  0x27   : > { %p1045_p1 = scmp.lt.s32.totalorder %s1043_s5, %s1039_s3 }
  0x28   : > { %568 = vperm.xlu0 %1018, %v564_v3   ;;  %p1041_p12 = pnand %p1040_p11, %p1231_p5 }
  0x29   : > { %p1046_p2 = por %p1045_p1, %p1044_p0 }
  0x2a   : > { %v473_v4 = vld.sshfl [vmem:[#allocation1] sm:$0xff pattern:$0x73625140]  ;;  %v474_v5 = vld.sshfl [vmem:[#allocation1 + $0x8] sm:$0xff pattern:$0x73625140]  ;;  %p1042_p13 = pneg %p1041_p12 }
  0x2b   : > { %v480_v6 = vsel %vm479_vm0, %v473_v4, 0  ;;  %v482_v7 = vsel %vm479_vm0, %v474_v5, 0 }
  0x2c   : > { %491 = vmatpush.bf16.msra.mxu0 %v480_v6  ;;  %504 = vmatpush.bf16.msra.mxu1 %v482_v7  ;;  %p1047_p3 = pnand %p1046_p2, %p1042_p13 }
  0x2f   : > { %932 = vmatmul.msk.bf16.vlgmr.msra.gmra.mxu0 %vm475_vm1, %v464_v9  ;;  %933 = vmatmul.msk.bf16.vlgmr.msra.gmra.mxu1 %vm475_vm1, %v464_v9 }
  0x30   : > { %626 = vperm.xlu0 %1018, %v622_v8  }
  0x38   : > { %631 = vperm.xlu0 %1018, %v623_v10  }
  0x92   : > { %v469_v12 = vpop.permute.xlu0 %468 }
  0x93   : > { %v574_v35 = vpop.permute.xlu1 %573 }
  0x9a   : > { %v569_v36 = vpop.permute.xlu0 %568 }
  0xa2   : > { %v627_v56 = vpop.permute.xlu0 %626 }
  0xaa   : > { %v632_v62 = vpop.permute.xlu0 %631 }
  0xac   : > { %v493_v13 = vpop.f32.mrf.mxu0  ;;  %v506_v14 = vpop.f32.mrf.mxu1 }
  0xad   : > { %v494_v15 = vadd.f32 %v493_v13, %v469_v12  ;;  %v507_v16 = vadd.f32 %v506_v14, %v469_v12 }
  0xaf   : > { %v558_v17 = vmax.f32 %v494_v15, 0.0  ;;  %v559_v18 = vmax.f32 %v507_v16, 0.0  ;;  %v511_v19 = vpack.c.bf16 %v494_v15, %v494_v15  ;;  %v512_v20 = vpack.c.bf16 %v507_v16, %v507_v16 }
  0xb1   : > { %v525_v21 = vsel %vm523_vm2, %v511_v19, 0  ;;  %v528_v22 = vsel %vm523_vm2, %v512_v20, 0  ;;  %v560_v23 = vpack.c.bf16 %v558_v17, %v558_v17  ;;  %v561_v24 = vpack.c.bf16 %v559_v18, %v559_v18 }
  0xb2   : > { %537 = vmatpush.bf16.msra.mxu2 %v525_v21  ;;  %550 = vmatpush.bf16.msra.mxu3 %v528_v22 }
  0xb3   : > { %v585_v26 = vsel %vm523_vm2, %v560_v23, 0  ;;  %v588_v27 = vsel %vm523_vm2, %v561_v24, 0 }
  0xb4   : > { %v495_v29 = vpop.f32.mrf.mxu0  ;;  %v508_v30 = vpop.f32.mrf.mxu1  ;;  %597 = vmatpush.bf16.msrb.mxu0 %v585_v26  ;;  %611 = vmatpush.bf16.msrb.mxu1 %v588_v27 }
  0xb5   : > { %934 = vmatmul.msk.bf16.vlgmr.msra.gmra.mxu2 %vm519_vm3, %v510_v25  ;;  %935 = vmatmul.msk.bf16.vlgmr.msra.gmra.mxu3 %vm519_vm3, %v510_v25 }
  0xb7   : > { %940 = vmatmul.msk.bf16.vlgmr.msrb.gmra.mxu0 %vm519_vm3, %v962_v28  ;;  %941 = vmatmul.msk.bf16.vlgmr.msrb.gmra.mxu1 %vm519_vm3, %v962_v28 }
 0x134   : > { %v599_v31 = vpop.f32.mrf.mxu0  ;;  %v613_v32 = vpop.f32.mrf.mxu1 }
 0x135   : > { %v600_v39 = vadd.f32 %v599_v31, %v569_v36  ;;  %v614_v40 = vadd.f32 %v613_v32, %v569_v36 }
 0x137   : > { %v675_v50 = vmax.f32 %v600_v39, 0.0  ;;  %v676_v51 = vmax.f32 %v614_v40, 0.0 }
 0x138   : > { %v1275_v33 = vpop.f32.mrf.mxu2  ;;  %v1277_v34 = vpop.f32.mrf.mxu3 }
 0x13c   : > { %v601_v37 = vpop.f32.mrf.mxu0  ;;  %v615_v38 = vpop.f32.mrf.mxu1 }
 0x13d   : > { %v602_v41 = vadd.f32 %v601_v37, %v574_v35  ;;  %v616_v42 = vadd.f32 %v615_v38, %v574_v35 }
 0x13f   : > { %v677_v43 = vmax.f32 %v602_v41, 0.0  ;;  %v678_v44 = vmax.f32 %v616_v42, 0.0  ;;  %v620_v45 = vpack.c.bf16 %v602_v41, %v600_v39  ;;  %v621_v46 = vpack.c.bf16 %v616_v42, %v614_v40 }
 0x140   : > { %v541_v47 = vpop.f32.mrf.mxu2  ;;  %v554_v48 = vpop.f32.mrf.mxu3 }
 0x141   : > { %650 = vmatpush.bf16.msrb.mxu2 %v620_v45  ;;  %664 = vmatpush.bf16.msrb.mxu3 %v621_v46 }
 0x142   : > { %701 = vmatpush.msra.mxu0 %v677_v43  ;;  %724 = vmatpush.msra.mxu1 %v678_v44 }
 0x144   : > { %702 = vmatpush.msra.mxu0 %v675_v50  ;;  %725 = vmatpush.msra.mxu1 %v676_v51 }
 0x145   : > { %966 = vmatpush.msra.mxu2 %v677_v43  ;;  %968 = vmatpush.msra.mxu3 %v678_v44 }
 0x146   : > { %946 = vmatmul.msk.bf16.vlgmr.msrb.gmra.mxu2 %vm639_vm4, %v963_v49  ;;  %947 = vmatmul.msk.bf16.vlgmr.msrb.gmra.mxu3 %vm639_vm4, %v963_v49 }
 0x147   : > { %967 = vmatpush.msra.mxu2 %v675_v50  ;;  %969 = vmatpush.msra.mxu3 %v676_v51 }
 0x148   : > { %948 = vmatmul.msk.f32.vlgmr.msra.gmra.mxu0 %vm639_vm4, %v679_v52  ;;  %950 = vmatmul.msk.f32.vlgmr.msra.gmra.mxu1 %vm639_vm4, %v679_v52 }
 0x156   : > { %949 = vmatmul.msk.f32.vlgmr.msra.gmra.mxu2 %vm639_vm4, %v680_v53  ;;  %951 = vmatmul.msk.f32.vlgmr.msra.gmra.mxu3 %vm639_vm4, %v680_v53 }
 0x1c5   : > { %v704_v54 = vpop.f32.mrf.mxu0  ;;  %v727_v55 = vpop.f32.mrf.mxu1 }
 0x1c6   : > { %v733_v57 = vadd.f32 %v727_v55, %v704_v54 }
 0x1c8   : > { %734 = vadd.xlane.f32.xlu1 %v733_v57 }
 0x1c9   : > { %v652_v58 = vpop.f32.mrf.mxu2  ;;  %v666_v59 = vpop.f32.mrf.mxu3 }
 0x1ca   : > { %v653_v60 = vadd.f32 %v652_v58, %v627_v56  ;;  %v667_v61 = vadd.f32 %v666_v59, %v627_v56 }
 0x1cc   : > { %671 = vst [vmem:[%s451_s30] sm:$0xff] %v653_v60 }
 0x1cd   : > { %672 = vst [vmem:[%s451_s30 + $0x8] sm:$0xff] %v667_v61 }
 0x1d1   : > { %v654_v63 = vpop.f32.mrf.mxu2  ;;  %v668_v0 = vpop.f32.mrf.mxu3 }
 0x1d2   : > { %v655_v1 = vadd.f32 %v654_v63, %v632_v62  ;;  %v669_v2 = vadd.f32 %v668_v0, %v632_v62 }
 0x1d4   : > { %673 = vst [vmem:[%s451_s30 + $0x10] sm:$0xff] %v655_v1 }
 0x1d5   : > { %674 = vst [vmem:[%s451_s30 + $0x18] sm:$0xff] %v669_v2 }
 0x1d9   : > { %v707_v3 = vpop.f32.mrf.mxu2  ;;  %v730_v4 = vpop.f32.mrf.mxu3 }
 0x1da   : > { %v736_v5 = vsel %vm479_vm0, %v707_v3, 0.0  ;;  %v737_v6 = vsel %vm479_vm0, %v730_v4, 0.0 }
 0x1db   : > { %v738_v7 = vadd.f32 %v737_v6, %v736_v5 }
 0x1dd   : > { %739 = vadd.xlane.f32.xlu2 %v738_v7 }
 0x1de   : > { %1050 = shalt.err (!%p1047_p3)
}
 0x1df   : > { %s1120_s16 = smov 256   ;;  %s1121_s20 = smov 16   ;;  %v513_v8 = vld [vmem:[%s1363_s6] sm:$0xff]  ;;  %v1122_v9 = vmov 256.0   ;;  %vm754_vm6 = vcmask 7168   ;;  %vm756_vm7 = vcmask 1024  }
 0x1e0   : > { %971 = dma.vmem_to_hbm [thread:$0]  (%p1231_p5), %s800_s15, 512, %s802_s24, %s769_s0, %s1120_s16, %s1120_s16, %s1121_s20   ;;  %1021 = vrcp.f32 %v1122_v9 }
 0x1e1   : > { %v750_v16 = vld [vmem:[%s1367_s10] sm:$0xff]  ;;  %s961_s0 = sshll.u32 %s1246_s22, 4  ;;  %v751_v20 = vld [vmem:[%s1367_s10 + $0x8] sm:$0x3]  ;;  %s926_s24 = sshll.u32 %s1289_s23, 4 }
 0x1e2   : > { %s461_s7 = scalar_lea.vmem %s1368_s11, %s961_s0  ;;  %s964_s30 = sshll.u32 %s1214_s29, 4 }
 0x1e3   : > { %s783_s20 = scalar_lea.hbm %s1369_s12, %s964_s30  ;;  %s444_s2 = scalar_lea.vmem [#allocation2], %s926_s24 }
 0x1e4   : > { %s785_s21 = sshll.u32 %s444_s2, 4  ;;  %s787_s1 = sshll.u32 %s783_s20, 4  ;;  %s786_s21 = int_to_ptr.vmem [resolvable:$true] %s785_s21  ;;  %s788_s1 = int_to_ptr.hbm [resolvable:$true] %s787_s1 }
 0x1e5   : > { %s764_s29 = scalar_lea.sflag [#allocation3], %s1289_s23  ;;  %s1065_s3 = sshra.s32 %s788_s1, 4  ;;  %s1066_s3 = int_to_ptr.hbm [resolvable:$true] %s1065_s3 }
 0x1e6   : > { %v1022_v10 = vpop.eup %1021  ;;  %s1067_s0 = scalar_lea.hbm %s1066_s3, 16  ;;  %p1072_p9 = scmp.lt.s32.totalorder %s1066_s3, %s1369_s12 }
 0x1e7   : > { %v742_v11 = vmul.f32 256.0, %v1022_v10  ;;  %vm746_vm5 = vweird.f32 %v1022_v10  ;;  %p1068_p4 = scmp.ne.s32.totalorder %s1066_s3, %s1067_s0 }
 0x1e9   : > { %v743_v12 = vsub.f32 1.0, %v742_v11  ;;  %p1069_p7 = pnand %p1068_p4, %p1231_p5 }
 0x1eb   : > { %v744_v13 = vmul.f32 %v1022_v10, %v743_v12  ;;  %p1070_p8 = pneg %p1069_p7 }
 0x1ed   : > { %v745_v14 = vadd.f32 %v1022_v10, %v744_v13 }
 0x1ef   : > { %v747_v15 = vsel %vm746_vm5, %v1022_v10, %v745_v14 }
 0x1f5   : > { %516 = vperm.xlu2 %1020, %v513_v8  }
 0x23b   : > { %v735_v17 = vpop.xlane.xlu1 %734 }
 0x23c   : > { %v748_v18 = vmul.f32 %v747_v15, %v735_v17 }
 0x23e   : > { %v752_v19 = vadd.f32 %v750_v16, %v748_v18 }
 0x240   : > { %755 = vst.msk [vmem:[%s461_s7] sm:$0xff] %vm754_vm6, %v752_v19 }
 0x250   : > { %v740_v21 = vpop.xlane.xlu2 %739 }
 0x251   : > { %v749_v22 = vmul.f32 %v747_v15, %v740_v21 }
 0x253   : > { %v753_v23 = vadd.f32 %v751_v20, %v749_v22 }
 0x255   : > { %757 = vst.msk [vmem:[%s461_s7 + $0x8] sm:$0x3] %vm756_vm7, %v753_v23  ;;  %s1071_s7 = scalar_lea.hbm %s1369_s12, 32 }
 0x256   : > { %p1073_p10 = scmp.lt.s32.totalorder %s1071_s7, %s1067_s0 }
 0x258   : > { %v517_v24 = vpop.permute.xlu2 %516  ;;  %p1074_p11 = por %p1073_p10, %p1072_p9 }
 0x259   : > { %v540_v25 = vadd.f32 %v1275_v33, %v517_v24  ;;  %v553_v26 = vadd.f32 %v1277_v34, %v517_v24 }
 0x25a   : > { %p1075_p12 = pnand %p1074_p11, %p1070_p8 }
 0x25b   : > { %556 = vst [vmem:[%s444_s2] sm:$0xff] %v540_v25 }
 0x25c   : > { %557 = vst [vmem:[%s444_s2 + $0x8] sm:$0xff] %v553_v26 }
 0x25d   : > { %1078 = shalt.err (!%p1075_p12)
}
 0x25e   : > { %970 = dma.vmem_to_hbm [thread:$0]  (%p1231_p5), %s786_s21, 256, %s788_s1, %s764_s29  }
 0x25f PF: > { %p981_p13 = scmp.ge.s32.totalorder %s1117_s28, 2  ;;  %s824_s23 = sand.u32 1, %s1105_s25  }
 0x260   : > { %s825_s24 = scalar_lea.sflag [#allocation3], %s824_s23 }
 0x261   : > { %p975_p0 = pnand %p981_p13, %p1235_p6 }
 0x263   : > { %p976_p1 = pneg %p975_p0 }
 0x265   : > { %1096 = dma.done.wait (%p976_p1), %s825_s24, 256  }
 0x266   : > { %1098 = vsyncadd (%p976_p1), %s825_s24, 4294967040  ;;  %s835_s30 = scalar_lea.sflag [#allocation5], %s824_s23 }
 0x267   : > { %1100 = dma.done.wait (%p976_p1), %s835_s30, 512  }
 0x268   : > { %1102 = vsyncadd (%p976_p1), %s835_s30, 4294966784  ;;  %p27_p5 = scmp.ge.s32.totalorder %s1218_s14, 4   ;;  %s1389_s25 = smov %s1109_s26 }
 0x269   : > { %s1390_s26 = smov %s1113_s27  ;;  %s1391_s27 = smov %s1229_s17 }
 0x26a   : > { %s1392_s28 = smov %s1218_s14  ;;  %29 = sbr.rel (!%p27_p5) target bundleno = 14 (0xe), region = 128 }
 0x26f   :  { %841 = vsyncpa [#allocation3], 1 }
 0x270   :  { %843 = vsyncpa [#allocation3 + $0x1], 1 }
 0x271   :  { %844 = vsyncpa [#allocation5], 1 }
 0x272   :  { %846 = vsyncpa [#allocation5 + $0x1], 1 }

</bundles_post_ra>
